<compile_context>
chip_gen: v7x
topology: tpu7x:2x2x1
jax: 0.10.0
libtpu: 0.0.40
codegen_flags: <defaults>
</compile_context>

<pallas_src>
import functools

import jax
import jax.numpy as jnp
from jax import lax
from jax.experimental import pallas as pl
from jax.experimental.pallas import tpu as pltpu


_NORM_EPS2 = 1e-24   # (torch F.normalize eps = 1e-12) ** 2
_SQ_EPS = 1e-12      # clamp on squared distances before rsqrt (max logit 1e6)


def _normalize_kernel(face_ref, audio_ref, fn_ref, an_ref, diag_ref):
    """L2-normalize one row tile of face/audio and emit the diagonal logit."""
    f = face_ref[...].astype(jnp.float32)                      # (TM, D)
    a = audio_ref[...].astype(jnp.float32)                     # (TM, D)
    # x / max(||x||, eps)  ==  x * rsqrt(max(||x||^2, eps^2))
    f_r = lax.rsqrt(jnp.maximum(jnp.sum(f * f, axis=1, keepdims=True), _NORM_EPS2))
    a_r = lax.rsqrt(jnp.maximum(jnp.sum(a * a, axis=1, keepdims=True), _NORM_EPS2))
    fn = f * f_r
    an = a * a_r
    fn_ref[...] = fn
    an_ref[...] = an
    # Target (diagonal) logit from the direct difference (no cancellation).
    d = fn - an
    dsq = jnp.sum(d * d, axis=1, keepdims=True)                # (TM, 1)
    diag_ref[...] = jnp.transpose(lax.rsqrt(jnp.maximum(dsq, _SQ_EPS)))  # (1, TM)


def _loss_kernel(fn_ref, an_ref, diag_ref, out_ref, m_sc, l_sc, *,
                 n_valid, tn, need_mask):
    j = pl.program_id(1)                 # audio-row (logit column) tile index

    @pl.when(j == 0)
    def _init():
        m_sc[...] = jnp.full_like(m_sc, -jnp.inf)
        l_sc[...] = jnp.zeros_like(l_sc)

    fn = fn_ref[...]                     # (TM, D) unit-norm rows
    an = an_ref[...]                     # (TN, D) unit-norm rows

    # Pairwise logits on the MXU: ||fn_i - an_j||^2 == 2 - 2 <fn_i, an_j>
    gram = lax.dot_general(fn, an, (((1,), (1,)), ((), ())),
                           preferred_element_type=jnp.float32)   # (TM, TN)
    cross = lax.rsqrt(jnp.maximum(2.0 - 2.0 * gram, _SQ_EPS))

    if need_mask:                        # static: only emitted when N was padded
        col = j * tn + lax.broadcasted_iota(jnp.int32, (1, tn), 1)
        cross = jnp.where(col < n_valid, cross, -jnp.inf)

    # Online softmax (running max / normalizer per face row).
    m_prev = m_sc[...]
    m_new = jnp.maximum(m_prev, jnp.max(cross, axis=1, keepdims=True))
    alpha = jnp.exp(m_prev - m_new)
    l_sc[...] = alpha * l_sc[...] + jnp.sum(jnp.exp(cross - m_new),
                                            axis=1, keepdims=True)
    m_sc[...] = m_new

    @pl.when(j == pl.num_programs(1) - 1)
    def _finalize():
        lse = m_sc[...] + jnp.log(l_sc[...])                    # (TM, 1)
        # Lane-dense per-row loss: one (1, TM) row store per row tile.
        out_ref[...] = jnp.transpose(lse) - diag_ref[...]


def _round_up(x, m):
    return ((x + m - 1) // m) * m


def _pow2_at_most(x, cap):
    p = 8
    while p * 2 <= min(x, cap):
        p *= 2
    return p


def _pick_tiles(n):
    # Column tile TN: widest power of two in [128, 1024] that adds no padding
    # beyond the unavoidable 128-lane alignment (fewer grid steps, less audio
    # re-streaming from HBM, MXU-friendly width).
    base = _round_up(n, 128)
    tn = 128
    for cand in (1024, 512, 256):
        if cand <= base and _round_up(n, cand) == base:
            tn = cand
            break
    # Row tile TM: power of two <= min(256, TN), ~n/2 so the 'parallel' row
    # axis has >= 2 tiles and can shard across both TensorCores on v7x.
    tm = _pow2_at_most(max(8, n // 2), min(256, tn))
    return tm, tn
    # NOTE: pipeline_mode=pl.Buffered(3) on the audio stream and a bf16 gram
    # cast are further v5e-only options; not applied by default.


def softmax_contrastive_loss(face_feat, audio_feat):
    n, d = face_feat.shape
    assert audio_feat.shape == (n, d)

    tm, tn = _pick_tiles(n)
    cp = _round_up(n, tn)           # padded column extent (audio rows); tm | cp
    rp = _round_up(n, tm)           # padded row extent actually iterated (<= cp)

    if cp != n:                     # zero-pad; padding is masked in-kernel
        face_p = jnp.pad(face_feat, ((0, cp - n), (0, 0)))
        audio_p = jnp.pad(audio_feat, ((0, cp - n), (0, 0)))
    else:
        face_p, audio_p = face_feat, audio_feat

    # ---- prologue: normalize rows once + precompute the diagonal logits ----
    fn, an, diag = pl.pallas_call(
        _normalize_kernel,
        out_shape=(
            jax.ShapeDtypeStruct((cp, d), jnp.float32),
            jax.ShapeDtypeStruct((cp, d), jnp.float32),
            jax.ShapeDtypeStruct((cp // tm, 1, tm), jnp.float32),
        ),
        grid_spec=pltpu.PrefetchScalarGridSpec(
            num_scalar_prefetch=0,
            grid=(cp // tm,),
            in_specs=[
                pl.BlockSpec((tm, d), lambda i: (i, 0)),
                pl.BlockSpec((tm, d), lambda i: (i, 0)),
            ],
            out_specs=[
                pl.BlockSpec((tm, d), lambda i: (i, 0)),
                pl.BlockSpec((tm, d), lambda i: (i, 0)),
                pl.BlockSpec((None, 1, tm), lambda i: (i, 0, 0)),
            ],
        ),
        compiler_params=pltpu.CompilerParams(
            dimension_semantics=("parallel",)),
    )(face_p, audio_p)

    # ---- main online-softmax kernel over (row tiles, column tiles) ----
    kernel = functools.partial(_loss_kernel, n_valid=n, tn=tn,
                               need_mask=(cp != n))
    per_row = pl.pallas_call(
        kernel,
        out_shape=jax.ShapeDtypeStruct((rp // tm, 1, tm), jnp.float32),
        grid_spec=pltpu.PrefetchScalarGridSpec(
            num_scalar_prefetch=0,
            grid=(rp // tm, cp // tn),
            in_specs=[
                pl.BlockSpec((tm, d), lambda i, j: (i, 0)),           # fn rows
                pl.BlockSpec((tn, d), lambda i, j: (j, 0)),           # an rows (streamed)
                pl.BlockSpec((None, 1, tm), lambda i, j: (i, 0, 0)),  # diag logits
            ],
            out_specs=pl.BlockSpec((None, 1, tm), lambda i, j: (i, 0, 0)),
            scratch_shapes=[
                pltpu.VMEM((tm, 1), jnp.float32),   # running max  m
                pltpu.VMEM((tm, 1), jnp.float32),   # running sum  l
            ],
        ),
        compiler_params=pltpu.CompilerParams(
            dimension_semantics=("parallel", "arbitrary"),
            vmem_limit_bytes=48 * 1024 * 1024,      # headroom below v7x's 64 MiB
        ),
    )(fn, an, diag)

    # Mean over the n valid rows only (padded rows are excluded).
    return jnp.sum(per_row.reshape(-1)[:n]) / n


def _reference_loss(face, audio):
    """Pure-JAX reference mirroring the PyTorch module exactly."""
    fn = face / jnp.maximum(jnp.linalg.norm(face, axis=1, keepdims=True), 1e-12)
    an = audio / jnp.maximum(jnp.linalg.norm(audio, axis=1, keepdims=True), 1e-12)
    dist = jnp.linalg.norm(fn[:, None, :] - an[None, :, :], axis=2)   # (N, N)
    cross = 1.0 / dist
    n = face.shape[0]
    logz = jax.nn.logsumexp(cross, axis=1)
    return jnp.mean(logz - cross[jnp.arange(n), jnp.arange(n)])


if __name__ == "__main__":
    N, D = 8, 32
    k1, k2 = jax.random.split(jax.random.PRNGKey(0))
    face_feat = jax.random.normal(k1, (N, D), dtype=jnp.float32)
    audio_feat = jax.random.normal(k2, (N, D), dtype=jnp.float32)

    loss = jax.block_until_ready(softmax_contrastive_loss(face_feat, audio_feat))
    ref = jax.block_until_ready(_reference_loss(face_feat, audio_feat))
    assert jnp.allclose(loss, ref, rtol=1e-4, atol=1e-5), (loss, ref)

    print("KERNEL_OK")
</pallas_src>

<mosaic_0001>
module attributes {stable_mosaic.version = 11 : i64} {
  func.func @_normalize_kernel(%arg0: i32, %arg1: memref<8x32xf32, #tpu.memory_space<vmem>>, %arg2: memref<8x32xf32, #tpu.memory_space<vmem>>, %arg3: memref<8x32xf32, #tpu.memory_space<vmem>>, %arg4: memref<8x32xf32, #tpu.memory_space<vmem>>, %arg5: memref<1x1x8xf32, #tpu.memory_space<vmem>>) attributes {dimension_semantics = [#tpu.dimension_semantics<parallel>], iteration_bounds = array<i64: 16>, scalar_prefetch = 0 : i64, scratch_operands = 0 : i64, tpu.core_type = #tpu.core_type<tc>, window_params = [{transform_indices = @transform_0, window_bounds = array<i64: 8, 32>}, {transform_indices = @transform_1, window_bounds = array<i64: 8, 32>}, {transform_indices = @transform_2, window_bounds = array<i64: 8, 32>}, {transform_indices = @transform_3, window_bounds = array<i64: 8, 32>}, {transform_indices = @transform_4, window_bounds = array<i64: 1, 1, 8>}]} {
    %c0 = arith.constant 0 : index
    %c0_0 = arith.constant 0 : index
    %0 = vector.load %arg1[%c0, %c0_0] : memref<8x32xf32, #tpu.memory_space<vmem>>, vector<8x32xf32>
    %c0_1 = arith.constant 0 : index
    %c0_2 = arith.constant 0 : index
    %1 = vector.load %arg2[%c0_1, %c0_2] : memref<8x32xf32, #tpu.memory_space<vmem>>, vector<8x32xf32>
    %2 = arith.mulf %0, %0 : vector<8x32xf32>
    %cst = arith.constant dense<0.000000e+00> : vector<8xf32>
    %3 = vector.multi_reduction <add>, %2, %cst [1] : vector<8x32xf32> to vector<8xf32>
    %4 = vector.shape_cast %3 : vector<8xf32> to vector<8x1xf32>
    %cst_3 = arith.constant 1.000000e-24 : f32
    %5 = vector.broadcast %cst_3 : f32 to vector<8x1xf32>
    %6 = arith.maximumf %4, %5 : vector<8x1xf32>
    %7 = math.rsqrt %6 : vector<8x1xf32>
    %8 = arith.mulf %1, %1 : vector<8x32xf32>
    %cst_4 = arith.constant dense<0.000000e+00> : vector<8xf32>
    %9 = vector.multi_reduction <add>, %8, %cst_4 [1] : vector<8x32xf32> to vector<8xf32>
    %10 = vector.shape_cast %9 : vector<8xf32> to vector<8x1xf32>
    %cst_5 = arith.constant 1.000000e-24 : f32
    %11 = vector.broadcast %cst_5 : f32 to vector<8x1xf32>
    %12 = arith.maximumf %10, %11 : vector<8x1xf32>
    %13 = math.rsqrt %12 : vector<8x1xf32>
    %14 = vector.broadcast %7 : vector<8x1xf32> to vector<8x32xf32>
    %15 = arith.mulf %0, %14 : vector<8x32xf32>
    %16 = vector.broadcast %13 : vector<8x1xf32> to vector<8x32xf32>
    %17 = arith.mulf %1, %16 : vector<8x32xf32>
    %c0_6 = arith.constant 0 : index
    %c0_7 = arith.constant 0 : index
    %18 = vector.load %arg3[%c0_6, %c0_7] : memref<8x32xf32, #tpu.memory_space<vmem>>, vector<8x32xf32>
    tpu.vector_store %arg3[%c0_6, %c0_7], %15 {strides = array<i32>} : memref<8x32xf32, #tpu.memory_space<vmem>>, vector<8x32xf32>,
    %c0_8 = arith.constant 0 : index
    %c0_9 = arith.constant 0 : index
    %19 = vector.load %arg4[%c0_8, %c0_9] : memref<8x32xf32, #tpu.memory_space<vmem>>, vector<8x32xf32>
    tpu.vector_store %arg4[%c0_8, %c0_9], %17 {strides = array<i32>} : memref<8x32xf32, #tpu.memory_space<vmem>>, vector<8x32xf32>,
    %20 = arith.subf %15, %17 : vector<8x32xf32>
    %21 = arith.mulf %20, %20 : vector<8x32xf32>
    %cst_10 = arith.constant dense<0.000000e+00> : vector<8xf32>
    %22 = vector.multi_reduction <add>, %21, %cst_10 [1] : vector<8x32xf32> to vector<8xf32>
    %23 = vector.shape_cast %22 : vector<8xf32> to vector<8x1xf32>
    %cst_11 = arith.constant 9.99999996E-13 : f32
    %24 = vector.broadcast %cst_11 : f32 to vector<8x1xf32>
    %25 = arith.maximumf %23, %24 : vector<8x1xf32>
    %26 = math.rsqrt %25 : vector<8x1xf32>
    %27 = tpu.transpose %26, [1, 0] : vector<8x1xf32> -> vector<1x8xf32>
    %c0_12 = arith.constant 0 : index
    %c0_13 = arith.constant 0 : index
    %c0_14 = arith.constant 0 : index
    %28 = vector.load %arg5[%c0_12, %c0_13, %c0_14] : memref<1x1x8xf32, #tpu.memory_space<vmem>>, vector<1x1x8xf32>
    %29 = vector.shape_cast %28 : vector<1x1x8xf32> to vector<1x8xf32>
    %30 = vector.shape_cast %27 : vector<1x8xf32> to vector<1x1x8xf32>
    tpu.vector_store %arg5[%c0_12, %c0_13, %c0_14], %30 {strides = array<i32>} : memref<1x1x8xf32, #tpu.memory_space<vmem>>, vector<1x1x8xf32>,
    return
  }
  func.func @transform_0(%arg0: i32) -> (i32, i32) {
    %c0_i32 = arith.constant 0 : i32
    %c0_i32_0 = arith.constant 0 : i32
    return %arg0, %c0_i32 : i32, i32
  }
  func.func @transform_1(%arg0: i32) -> (i32, i32) {
    %c0_i32 = arith.constant 0 : i32
    %c0_i32_0 = arith.constant 0 : i32
    return %arg0, %c0_i32 : i32, i32
  }
  func.func @transform_2(%arg0: i32) -> (i32, i32) {
    %c0_i32 = arith.constant 0 : i32
    %c0_i32_0 = arith.constant 0 : i32
    return %arg0, %c0_i32 : i32, i32
  }
  func.func @transform_3(%arg0: i32) -> (i32, i32) {
    %c0_i32 = arith.constant 0 : i32
    %c0_i32_0 = arith.constant 0 : i32
    return %arg0, %c0_i32 : i32, i32
  }
  func.func @transform_4(%arg0: i32) -> (i32, i32, i32) {
    %c0_i32 = arith.constant 0 : i32
    %c0_i32_0 = arith.constant 0 : i32
    %c0_i32_1 = arith.constant 0 : i32
    return %arg0, %c0_i32, %c0_i32_0 : i32, i32, i32
  }
}

</mosaic_0001>

<bundles_post_ra>
// kernel: tpu_custom_call.1
= control target key start
LH: loop header
LB: loop body
LE: loop exit
PB: predicated region body
PF: predicated region fallthrough
CT: control target
= control target key end

     0   :  { %s469_s15 = smov 0   ;;  %s504_s0 = inlined_call_operand.vmem [shape: f32[128,32], index: 0, kind: input, shape index: {}]   ;;  %s505_s1 = inlined_call_operand.vmem [shape: f32[128,32], index: 1, kind: input, shape index: {}]   ;;  %s506_s2 = inlined_call_operand.vmem [shape: f32[128,32], index: 2, kind: output, shape index: {0}]   ;;  %s507_s3 = inlined_call_operand.vmem [shape: f32[128,32], index: 3, kind: output, shape index: {1}]   ;;  %s508_s4 = inlined_call_operand.vmem [shape: f32[16,1,8], index: 4, kind: output, shape index: {2}]  }
   0x1 LB: > { %s410_s16 = sadd.s32 4294967295, %s442_s15   ;;  %p414_p0 = scmp.ge.s32.totalorder %s442_s15, 1  ;;  %s442_s15 = sphi %s469_s15, %s15_s15  }
   0x2   : > { %p175_p1 = scmp.lt.s32.totalorder %s442_s15, 17 }
   0x4   : > { %p176_p2 = pnand %p414_p0, %p175_p1 }
   0x5   : > { %p210_p3 = scmp.lt.s32.totalorder (!%p176_p2), %s410_s16, 15  ;;  %vm232_vm0 = vcmask (!%p176_p2), 261120   ;;  %vm287_vm1 = vcmask (!%p176_p2), 57344  }
   0x6   : > { %179 = sbr.rel (%p176_p2) target bundleno = 471 (0x1d7), region = 28 }
   0xd   : > { %s510_s16 = smov (!%p210_p3, %s410_s16), 15 }
   0xe   : > { %s415_s17 = sshll.u32 %s510_s16, 3  ;;  %s228_s6 = scalar_lea.vmem %s508_s4, %s510_s16 }
   0xf   : > { %s213_s20 = scalar_lea.vmem %s504_s0, %s415_s17  ;;  %s217_s23 = scalar_lea.vmem %s505_s1, %s415_s17 }
  0x10   : > { %v229_v0 = vld [vmem:[%s213_s20] sm:$0xff]  ;;  %s221_s26 = scalar_lea.vmem %s506_s2, %s415_s17  ;;  %s225_s29 = scalar_lea.vmem %s507_s3, %s415_s17 }
  0x11   : > { %v230_v1 = vld [vmem:[%s217_s23] sm:$0xff]  ;;  %v231_v2 = vmul.f32 %v229_v0, %v229_v0 }
  0x12   : > { %v238_v3 = vmul.f32 %v230_v1, %v230_v1 }
  0x13   : > { %v233_v4 = vsel %vm232_vm0, %v231_v2, 0.0 }
  0x14   : > { %234 = vadd.xlane.f32.xlu0 %v233_v4  ;;  %v239_v5 = vsel %vm232_vm0, %v238_v3, 0.0 }
  0x18   : > { %240 = vadd.xlane.f32.xlu0 %v239_v5 }
  0xa1   : > { %v235_v6 = vpop.xlane.xlu0 %234 }
  0xa2   : > { %v236_v7 = vmax.f32 %v235_v6, 1e-24 }
  0xa4   : > { %430 = vrsqrt.f32 %v236_v7 }
  0xa5   : > { %v241_v8 = vpop.xlane.xlu0 %240 }
  0xa6   : > { %v242_v9 = vmax.f32 %v241_v8, 1e-24 }
  0xa8   : > { %432 = vrsqrt.f32 %v242_v9 }
  0xae   : > { %v431_v10 = vpop.eup %430 }
  0xaf   : > { %v244_v11 = vmul.f32 %v431_v10, %v229_v0 }
  0xb1   : > { %246 = vst.msk [vmem:[%s221_s26] sm:$0xff] %vm232_vm0, %v244_v11 }
  0xb2   : > { %v433_v12 = vpop.eup %432 }
  0xb3   : > { %v245_v13 = vmul.f32 %v433_v12, %v230_v1 }
  0xb5   : > { %v248_v14 = vsub.f32 %v244_v11, %v245_v13  ;;  %247 = vst.msk [vmem:[%s225_s29] sm:$0xff] %vm232_vm0, %v245_v13 }
  0xb7   : > { %v249_v15 = vmul.f32 %v248_v14, %v248_v14 }
  0xb9   : > { %v250_v16 = vsel %vm232_vm0, %v249_v15, 0.0 }
  0xba   : > { %251 = vadd.xlane.f32.xlu1 %v250_v16 }
 0x147   : > { %v252_v17 = vpop.xlane.xlu1 %251 }
 0x148   : > { %v253_v18 = vmax.f32 %v252_v17, 1e-12 }
 0x14a   : > { %434 = vrsqrt.f32 %v253_v18 }
 0x154   : > { %v435_v19 = vpop.eup %434 }
 0x155   : > { %255 = vxpose.xlu1.b32.start.end [1/1] (short) (narrow) %v435_v19, 8 }
 0x1d5   : > { %v271_v20 = vpop.trf.xlu1 }
 0x1d6   : > { %288 = vst.msk [vmem:[%s228_s6] sm:$0x1] %vm287_vm1, %v271_v20 }
 0x1d7 PF: > { %s15_s15 = sadd.s32 1, %s442_s15  }
 0x1d8   : > { %p12_p4 = scmp.ge.s32.totalorder %s15_s15, 18  }
 0x1da   :  { %14 = sbr.rel (!%p12_p4) target bundleno = 1 (0x1), region = 85 }

</bundles_post_ra>
